<compile_context>
chip_gen: v5e
topology: v5e:2x2
jax: 0.10.0
libtpu: 0.0.40
codegen_flags: <defaults>
</compile_context>

<pallas_src>
import functools

import jax
import jax.numpy as jnp
from jax.experimental import pallas as pl
from jax.experimental.pallas import tpu as pltpu

_SUBLANE = 8  # batch tiles kept a multiple of 8 sublanes


def _round_up(n, m):
    return ((n + m - 1) // m) * m


def _cdiv(n, m):
    return (n + m - 1) // m


def _mlp_kernel(x_ref, w1_ref, b1_ref, w2_ref, b2_ref, o_ref):
    # fc1: (tb, S) @ (S, H) + (1, H), then ReLU.  f32 accumulation on MXU.
    h = jnp.dot(x_ref[...], w1_ref[...], preferred_element_type=jnp.float32)
    h = jnp.maximum(h + b1_ref[...], 0.0)
    # out: (tb, H) @ (H, A) + (1, A).  Written back un-padded (tb, A).
    a = jnp.dot(h, w2_ref[...], preferred_element_type=jnp.float32)
    o_ref[...] = (a + b2_ref[...]).astype(o_ref.dtype)


@functools.partial(jax.jit, static_argnames=("block_b",))
def net_forward(x, w1, b1, w2, b2, *, block_b=4096):
    """Forward pass of Net.

    x:  (B, S) f32
    w1: (S, H) f32   b1: (H,) f32     (fc1, stored transposed vs torch)
    w2: (H, A) f32   b2: (A,) f32     (out, stored transposed vs torch)
    returns (B, A) f32
    """
    B, S = x.shape
    H = w1.shape[1]
    A = w2.shape[1]

    # Batch tile: as large as block_b allows, multiple of 8 sublanes, no
    # padding of the batch itself (partial trailing block is masked).
    tb = min(block_b, _round_up(B, _SUBLANE))
    tb = max(_SUBLANE, _round_up(tb, _SUBLANE))
    # v7x has 2 TensorCores: if everything fits one grid step but the batch
    # is big enough to matter, split into two tiles so the "parallel" axis
    # shards across both cores.
    if _cdiv(B, tb) < 2 and B > 2 * _SUBLANE:
        tb = _round_up(_cdiv(B, 2), _SUBLANE)
    grid = _cdiv(B, tb)

    b1r = b1.reshape(1, H)
    b2r = b2.reshape(1, A)

    return pl.pallas_call(
        _mlp_kernel,
        out_shape=jax.ShapeDtypeStruct((B, A), x.dtype),
        grid=(grid,),
        in_specs=[
            # x streams over the batch grid axis (auto double-buffered DMA).
            pl.BlockSpec((tb, S), lambda i: (i, 0)),
            # Weights / biases: constant index_map -> VMEM-resident, block
            # shape == full array dims (so no (8,128) padding needed).
            pl.BlockSpec((S, H), lambda i: (0, 0)),
            pl.BlockSpec((1, H), lambda i: (0, 0)),
            pl.BlockSpec((H, A), lambda i: (0, 0)),
            pl.BlockSpec((1, A), lambda i: (0, 0)),
        ],
        # Un-padded output: last dim A == full array dim, so this satisfies
        # the layout rule while writing only the real A columns to HBM.
        out_specs=pl.BlockSpec((tb, A), lambda i: (i, 0)),
        compiler_params=pltpu.CompilerParams(
            # Batch axis is independent -> shard across v7x's 2 TensorCores.
            dimension_semantics=("parallel",),
        ),
    )(x, w1, b1r, w2, b2r)


def _reference(x, w1, b1, w2, b2):
    return jnp.maximum(x @ w1 + b1, 0.0) @ w2 + b2


if __name__ == "__main__":
    # Shapes implied by the module: N_states=4, N_actions=4, Hidden=32.
    B, N_STATES, HIDDEN, N_ACTIONS = 2, 4, 32, 4

    key = jax.random.PRNGKey(0)
    kx, k1, kb1, k2, kb2, kbig, kodd = jax.random.split(key, 7)

    x = jax.random.normal(kx, (B, N_STATES), dtype=jnp.float32)
    w1 = jax.random.normal(k1, (N_STATES, HIDDEN), dtype=jnp.float32) * 0.1
    b1 = jax.random.normal(kb1, (HIDDEN,), dtype=jnp.float32) * 0.1
    w2 = jax.random.normal(k2, (HIDDEN, N_ACTIONS), dtype=jnp.float32) * 0.1
    b2 = jax.random.normal(kb2, (N_ACTIONS,), dtype=jnp.float32) * 0.1

    # Tiny DQN-shaped call (B=2 -> one partial 8-row tile, single grid step).
    out = jax.block_until_ready(net_forward(x, w1, b1, w2, b2))
    ref = _reference(x, w1, b1, w2, b2)
    assert out.shape == (B, N_ACTIONS)
    assert jnp.allclose(out, ref, atol=1e-5, rtol=1e-5)

    # Batched-evaluation path: B not a multiple of the tile -> exercises the
    # partial trailing block (masked boundary writes).
    B_big = 1000
    x_big = jax.random.normal(kbig, (B_big, N_STATES), dtype=jnp.float32)
    out_big = jax.block_until_ready(net_forward(x_big, w1, b1, w2, b2))
    ref_big = _reference(x_big, w1, b1, w2, b2)
    assert out_big.shape == (B_big, N_ACTIONS)
    assert jnp.allclose(out_big, ref_big, atol=1e-4, rtol=1e-4)

    # Odd batch not a multiple of 8 either.
    B_odd = 137
    x_odd = jax.random.normal(kodd, (B_odd, N_STATES), dtype=jnp.float32)
    out_odd = jax.block_until_ready(net_forward(x_odd, w1, b1, w2, b2))
    ref_odd = _reference(x_odd, w1, b1, w2, b2)
    assert out_odd.shape == (B_odd, N_ACTIONS)
    assert jnp.allclose(out_odd, ref_odd, atol=1e-5, rtol=1e-5)

    print("KERNEL_OK")
</pallas_src>

<mosaic_0001>
module attributes {stable_mosaic.version = 11 : i64} {
  func.func @_mlp_kernel(%arg0: i32, %arg1: memref<8x4xf32, #tpu.memory_space<vmem>>, %arg2: memref<4x32xf32, #tpu.memory_space<vmem>>, %arg3: memref<1x32xf32, #tpu.memory_space<vmem>>, %arg4: memref<32x4xf32, #tpu.memory_space<vmem>>, %arg5: memref<1x4xf32, #tpu.memory_space<vmem>>, %arg6: memref<8x4xf32, #tpu.memory_space<vmem>>) attributes {dimension_semantics = [#tpu.dimension_semantics<parallel>], iteration_bounds = array<i64: 1>, scalar_prefetch = 0 : i64, scratch_operands = 0 : i64, tpu.core_type = #tpu.core_type<tc>, window_params = [{transform_indices = @transform_0, window_bounds = array<i64: 8, 4>}, {pipeline_mode = #tpu.pipeline_mode<synchronous>, transform_indices = @transform_1, window_bounds = array<i64: 4, 32>}, {pipeline_mode = #tpu.pipeline_mode<synchronous>, transform_indices = @transform_2, window_bounds = array<i64: 1, 32>}, {pipeline_mode = #tpu.pipeline_mode<synchronous>, transform_indices = @transform_3, window_bounds = array<i64: 32, 4>}, {pipeline_mode = #tpu.pipeline_mode<synchronous>, transform_indices = @transform_4, window_bounds = array<i64: 1, 4>}, {transform_indices = @transform_5, window_bounds = array<i64: 8, 4>}]} {
    %c0 = arith.constant 0 : index
    %c0_0 = arith.constant 0 : index
    %0 = vector.load %arg1[%c0, %c0_0] : memref<8x4xf32, #tpu.memory_space<vmem>>, vector<8x4xf32>
    %c0_1 = arith.constant 0 : index
    %c0_2 = arith.constant 0 : index
    %1 = vector.load %arg2[%c0_1, %c0_2] : memref<4x32xf32, #tpu.memory_space<vmem>>, vector<4x32xf32>
    %cst = arith.constant dense<0.000000e+00> : vector<8x32xf32>
    %2 = tpu.matmul %0, %1, %cst {dimension_numbers = #tpu.dot_dimension_numbers<[1], [0], [0], [1], [0, 0, 1, 1], [], []>} : vector<8x4xf32>, vector<4x32xf32>, vector<8x32xf32> -> vector<8x32xf32>
    %c0_3 = arith.constant 0 : index
    %c0_4 = arith.constant 0 : index
    %3 = vector.load %arg3[%c0_3, %c0_4] : memref<1x32xf32, #tpu.memory_space<vmem>>, vector<1x32xf32>
    %4 = vector.broadcast %3 : vector<1x32xf32> to vector<8x32xf32>
    %5 = arith.addf %2, %4 : vector<8x32xf32>
    %cst_5 = arith.constant 0.000000e+00 : f32
    %6 = vector.broadcast %cst_5 : f32 to vector<8x32xf32>
    %7 = arith.maximumf %5, %6 : vector<8x32xf32>
    %c0_6 = arith.constant 0 : index
    %c0_7 = arith.constant 0 : index
    %8 = vector.load %arg4[%c0_6, %c0_7] : memref<32x4xf32, #tpu.memory_space<vmem>>, vector<32x4xf32>
    %cst_8 = arith.constant dense<0.000000e+00> : vector<8x4xf32>
    %9 = tpu.matmul %7, %8, %cst_8 {dimension_numbers = #tpu.dot_dimension_numbers<[1], [0], [0], [1], [0, 0, 1, 1], [], []>} : vector<8x32xf32>, vector<32x4xf32>, vector<8x4xf32> -> vector<8x4xf32>
    %c0_9 = arith.constant 0 : index
    %c0_10 = arith.constant 0 : index
    %10 = vector.load %arg5[%c0_9, %c0_10] : memref<1x4xf32, #tpu.memory_space<vmem>>, vector<1x4xf32>
    %11 = vector.broadcast %10 : vector<1x4xf32> to vector<8x4xf32>
    %12 = arith.addf %9, %11 : vector<8x4xf32>
    %c0_11 = arith.constant 0 : index
    %c0_12 = arith.constant 0 : index
    %13 = vector.load %arg6[%c0_11, %c0_12] : memref<8x4xf32, #tpu.memory_space<vmem>>, vector<8x4xf32>
    tpu.vector_store %arg6[%c0_11, %c0_12], %12 {strides = array<i32>} : memref<8x4xf32, #tpu.memory_space<vmem>>, vector<8x4xf32>,
    return
  }
  func.func @transform_0(%arg0: i32) -> (i32, i32) {
    %c0_i32 = arith.constant 0 : i32
    %c0_i32_0 = arith.constant 0 : i32
    return %arg0, %c0_i32 : i32, i32
  }
  func.func @transform_1(%arg0: i32) -> (i32, i32) {
    %c0_i32 = arith.constant 0 : i32
    %c0_i32_0 = arith.constant 0 : i32
    %c0_i32_1 = arith.constant 0 : i32
    return %c0_i32, %c0_i32_0 : i32, i32
  }
  func.func @transform_2(%arg0: i32) -> (i32, i32) {
    %c0_i32 = arith.constant 0 : i32
    %c0_i32_0 = arith.constant 0 : i32
    %c0_i32_1 = arith.constant 0 : i32
    return %c0_i32, %c0_i32_0 : i32, i32
  }
  func.func @transform_3(%arg0: i32) -> (i32, i32) {
    %c0_i32 = arith.constant 0 : i32
    %c0_i32_0 = arith.constant 0 : i32
    %c0_i32_1 = arith.constant 0 : i32
    return %c0_i32, %c0_i32_0 : i32, i32
  }
  func.func @transform_4(%arg0: i32) -> (i32, i32) {
    %c0_i32 = arith.constant 0 : i32
    %c0_i32_0 = arith.constant 0 : i32
    %c0_i32_1 = arith.constant 0 : i32
    return %c0_i32, %c0_i32_0 : i32, i32
  }
  func.func @transform_5(%arg0: i32) -> (i32, i32) {
    %c0_i32 = arith.constant 0 : i32
    %c0_i32_0 = arith.constant 0 : i32
    return %arg0, %c0_i32 : i32, i32
  }
}

</mosaic_0001>

<bundles_post_ra>
// kernel: net_forward.1
= control target key start
LH: loop header
LB: loop body
LE: loop exit
PB: predicated region body
PF: predicated region fallthrough
CT: control target
= control target key end

     0   :  { %10 = vsyncpa [#allocation3], 0  ;;  %vm31_vm0 = vcmask 1043456   ;;  %vm27_vm1 = vcmask 31744   ;;  %vm64_vm2 = vcmask 261120   ;;  %s203_s0 = inlined_call_operand.vmem [shape: f32[2,4], index: 0, kind: input, shape index: {}]   ;;  %s204_s1 = inlined_call_operand.vmem [shape: f32[4,32], index: 1, kind: input, shape index: {}]   ;;  %s205_s2 = inlined_call_operand.vmem [shape: f32[1,32], index: 2, kind: input, shape index: {}]   ;;  %s206_s3 = inlined_call_operand.vmem [shape: f32[32,4], index: 3, kind: input, shape index: {}]   ;;  %s207_s4 = inlined_call_operand.vmem [shape: f32[1,4], index: 4, kind: input, shape index: {}]   ;;  %s208_s5 = inlined_call_operand.hbm [shape: f32[2,4], index: 5, kind: output, shape index: {}]  }
   0x1   :  { %v22_v0 = vld [vmem:[%s204_s1] sm:$0xf]  ;;  %v59_v2 = vld [vmem:[%s206_s3 + $0x18] sm:$0xff]  ;;  %v58_v3 = vld [vmem:[%s206_s3 + $0x10] sm:$0xff] }
   0x2   :  { %v21_v1 = vld [vmem:[%s203_s0] sm:$0xff]  ;;  %107 = vmatpush.msk.msra.mxu0 %vm31_vm0, %v22_v0  ;;  %80 = vmatpush.msra.mxu1 %v59_v2  ;;  %v57_v4 = vld [vmem:[%s206_s3 + $0x8] sm:$0xff] }
   0x3   :  { %108 = vmatmul.msk.f32.vlgmr.msra.gmra.mxu0 %vm27_vm1, %v21_v1  ;;  %v56_v5 = vld [vmem:[%s206_s3] sm:$0xff] }
   0x4   :  { %81 = vmatpush.msra.mxu1 %v58_v3  ;;  %v113_v6 = vld [vmem:[%s205_s2] ss:$0 sm:$0xff] }
   0x5   :  { %v114_v10 = vld [vmem:[%s207_s4] ss:$0 sm:$0xff] }
   0x6   :  { %82 = vmatpush.msra.mxu1 %v57_v4 }
   0x8   :  { %83 = vmatpush.msra.mxu1 %v56_v5 }
  0x80   :  { %v52_v7 = vpop.f32.mrf.mxu0 }
  0x81   :  { %v53_v8 = vadd.f32 %v113_v6, %v52_v7 }
  0x83   :  { %v55_v9 = vmax.f32 %v53_v8, 0.0 }
  0x85   :  { %109 = vmatmul.msk.f32.vlgmr.msra.gmra.mxu1 %vm64_vm2, %v55_v9 }
 0x102   :  { %v85_v11 = vpop.f32.mrf.mxu1 }
 0x103   :  { %v86_v12 = vadd.f32 %v114_v10, %v85_v11 }
 0x105   :  { %88 = vst.msk [vmem:[#allocation2] sm:$0xff] %vm27_vm1, %v86_v12 }
 0x106   :  { %92 = vsyncadd [#allocation3], 96  ;;  %s95_s8 = sshll.u32 %s208_s5, 4  ;;  %s141_s9 = smov [#allocation2]   ;;  %s96_s8 = int_to_ptr.hbm [resolvable:$true] %s95_s8 }
 0x107   :  { %s93_s2 = sshll.u32 %s141_s9, 4  ;;  %s142_s10 = smov 32   ;;  %s94_s2 = int_to_ptr.vmem [resolvable:$true] %s93_s2 }
 0x108   :  { %s143_s11 = smov 2  }
 0x109   :  { %101 = dma.vmem_to_hbm [thread:$0]  %s94_s2, 32, %s96_s8, [#allocation3], %s142_s10, %s142_s10, %s143_s11  }
 0x10a   :  { %139 = dma.done.wait [#allocation3], 128  }
 0x10b   :  { %140 = vsyncadd [#allocation3], 4294967168 }
 0x10c   :  { %106 = vsyncpa [#allocation3], 1 }

</bundles_post_ra>
